<compile_context>
chip_gen: v5e
topology: v5e:2x2
jax: 0.10.0
libtpu: 0.0.40
codegen_flags: <defaults>
</compile_context>

<pallas_src>
import math
import functools

import jax
import jax.numpy as jnp
from jax import lax
from jax.experimental import pallas as pl
from jax.experimental.pallas import tpu as pltpu


# ---------------------------------------------------------------------------
# Fused Pallas kernel (question branch + tag branch in one launch)
# ---------------------------------------------------------------------------

def _here_last_kernel(q_ref, t_ref,
                      wcat_ref, mlp_b_ref, wb_ref, tm_b_ref,
                      tq_w_ref, tq_bias_pe_ref,
                      ln_w_ref, ln_b_ref,
                      gt_w_ref, gt_b_ref,
                      q_out_ref, t_out_ref):
    D = q_ref.shape[1]
    q = q_ref[...]

    # --- question branch --------------------------------------------------
    # One MXU push over the shared LHS q.  Columns [0:D) are the mlp Linear,
    # columns [D:2D) are q @ W_a (the q-part of trans_map).
    p = jnp.dot(q, wcat_ref[...], preferred_element_type=jnp.float32)     # (L, 2D)
    q2 = jnp.maximum(p[:, :D] + mlp_b_ref[...], 0.0)                      # relu(mlp(q))

    # trans_map(concat([q, q2, q2, q2])) == q @ W_a + q2 @ (W_b1+W_b2+W_b3) + b
    qa = jnp.maximum(
        p[:, D:]
        + jnp.dot(q2, wb_ref[...], preferred_element_type=jnp.float32)
        + tm_b_ref[...], 0.0)                                              # (L, D)

    # trans_ques with the positional encoding folded into its bias:
    #   relu((qa + pe) @ Wq + bq) == relu(qa @ Wq + (pe @ Wq + bq))
    qa = jnp.maximum(
        jnp.dot(qa, tq_w_ref[...], preferred_element_type=jnp.float32)
        + tq_bias_pe_ref[...], 0.0)                                        # (L, D)

    x = qa + q

    # LayerNorm with normalized_shape == q_emb.shape -> normalize over ALL elems.
    mean = jnp.mean(x)
    var = jnp.mean((x - mean) * (x - mean))
    xn = (x - mean) * lax.rsqrt(var + 1e-5)
    q_out_ref[...] = xn * ln_w_ref[...] + ln_b_ref[...]

    # --- tag branch ---------------------------------------------------------
    t = t_ref[...]
    gate = jax.nn.sigmoid(
        jnp.dot(t, gt_w_ref[...], preferred_element_type=jnp.float32)
        + gt_b_ref[...])
    t_out_ref[...] = gate * t


# ---------------------------------------------------------------------------
# One-time prep (weight packing, PE folding) + jitted forward
# ---------------------------------------------------------------------------

def prepare_here_last(params, L, D):
    """Hoisted setup: pre-transpose/pack weights and fold the PE table once."""
    # PyTorch Linear stores (out, in); kernel computes x @ W, so transpose.
    mlp_wT = params["mlp_w"].T                    # (D, D)
    tm_wT = params["trans_map_w"].T               # (4D, D)
    tq_wT = params["trans_ques_w"].T              # (D, D)

    w_a = tm_wT[:D, :]                                                    # acts on q
    w_b = tm_wT[D:2 * D, :] + tm_wT[2 * D:3 * D, :] + tm_wT[3 * D:4 * D, :]  # acts on q2
    w_cat = jnp.concatenate([mlp_wT, w_a], axis=1)   # (D, 2D): shared-LHS fusion

    # Positional encoding (assumes D even, as in the PyTorch `pos` closure).
    position = jnp.arange(L, dtype=jnp.float32)[:, None]
    div_term = jnp.exp(jnp.arange(0, D, 2, dtype=jnp.float32)
                       * (-(math.log(10000.0) / D)))
    pe = jnp.zeros((L, D), jnp.float32)
    pe = pe.at[:, 0::2].set(jnp.sin(position * div_term))
    pe = pe.at[:, 1::2].set(jnp.cos(position * div_term))

    # Fold pe through trans_ques: relu((r+pe)@Wq + bq) == relu(r@Wq + (pe@Wq + bq)).
    tq_bias_pe = pe @ tq_wT + params["trans_ques_b"][None, :]             # (L, D)

    return dict(
        w_cat=w_cat,
        mlp_b=params["mlp_b"][None, :],
        w_b=w_b,
        tm_b=params["trans_map_b"][None, :],
        tq_w=tq_wT,
        tq_bias_pe=tq_bias_pe,
        ln_w=params["ln_w"],
        ln_b=params["ln_b"],
        gt_w=params["gatetag_w"].T,
        gt_b=params["gatetag_b"][None, :],
    )


def _vmem_spec():
    return pl.BlockSpec(memory_space=pltpu.MemorySpace.VMEM)


@functools.partial(jax.jit, static_argnames=())
def here_last_forward(q_emb, t_emb, packed):
    """JAX/Pallas equivalent of HERE_Last.forward(). Returns (question_all, tag_all)."""
    L, D = q_emb.shape
    T = t_emb.shape[0]

    inputs = (
        q_emb, t_emb,
        packed["w_cat"], packed["mlp_b"], packed["w_b"], packed["tm_b"],
        packed["tq_w"], packed["tq_bias_pe"],
        packed["ln_w"], packed["ln_b"],
        packed["gt_w"], packed["gt_b"],
    )

    # Whole-array VMEM residency is fine at these sizes.
    # TODO(synk): for large L/T, switch to a row-tiled grid (BlockSpec over rows,
    # dimension_semantics=("parallel",)) with a two-pass full-(L,D) LayerNorm;
    # size tiles against ~32 MiB scoped VMEM (half that tile budget on v7x).
    question_all, tag_all = pl.pallas_call(
        _here_last_kernel,
        out_shape=(jax.ShapeDtypeStruct((L, D), jnp.float32),
                   jax.ShapeDtypeStruct((T, D), jnp.float32)),
        in_specs=[_vmem_spec() for _ in inputs],
        out_specs=(_vmem_spec(), _vmem_spec()),
    )(*inputs)

    return question_all, tag_all


# ---------------------------------------------------------------------------
# Pure-JAX reference (sanity check against the PyTorch semantics)
# ---------------------------------------------------------------------------

def here_last_reference(q_emb, t_emb, params):
    L, D = q_emb.shape
    relu = lambda x: jnp.maximum(x, 0.0)
    lin = lambda x, w, b: x @ w.T + b

    q2 = relu(lin(q_emb, params["mlp_w"], params["mlp_b"]))
    qa = jnp.concatenate([q_emb, q2, q2, q2], axis=1)
    qa = relu(lin(qa, params["trans_map_w"], params["trans_map_b"]))

    position = jnp.arange(L, dtype=jnp.float32)[:, None]
    div_term = jnp.exp(jnp.arange(0, D, 2, dtype=jnp.float32)
                       * (-(math.log(10000.0) / D)))
    pe = jnp.zeros((L, D), jnp.float32)
    pe = pe.at[:, 0::2].set(jnp.sin(position * div_term))
    pe = pe.at[:, 1::2].set(jnp.cos(position * div_term))

    qa = qa + pe
    qa = relu(lin(qa, params["trans_ques_w"], params["trans_ques_b"]))
    x = qa + q_emb
    mean = jnp.mean(x)
    var = jnp.mean((x - mean) ** 2)
    question_all = (x - mean) / jnp.sqrt(var + 1e-5) * params["ln_w"] + params["ln_b"]

    gate = jax.nn.sigmoid(lin(t_emb, params["gatetag_w"], params["gatetag_b"]))
    tag_all = gate * t_emb
    return question_all, tag_all


# ---------------------------------------------------------------------------
# Main
# ---------------------------------------------------------------------------

if __name__ == "__main__":
    # in_size == out_size is required by the module's own forward (concat + residual).
    L, T, D = 8, 8, 32     # q_emb rows, t_emb rows, hidden size

    key = jax.random.PRNGKey(0)
    ks = jax.random.split(key, 12)

    def linear_init(kw, kb, out_f, in_f):
        bound = 1.0 / math.sqrt(in_f)
        w = jax.random.uniform(kw, (out_f, in_f), jnp.float32, -bound, bound)
        b = jax.random.uniform(kb, (out_f,), jnp.float32, -bound, bound)
        return w, b

    q_emb = jax.random.normal(ks[0], (L, D), jnp.float32)
    t_emb = jax.random.normal(ks[1], (T, D), jnp.float32)

    mlp_w, mlp_b = linear_init(ks[2], ks[3], D, D)
    tm_w, tm_b = linear_init(ks[4], ks[5], D, 4 * D)
    tq_w, tq_b = linear_init(ks[6], ks[7], D, D)
    gt_w, gt_b = linear_init(ks[8], ks[9], D, D)

    params = {
        "mlp_w": mlp_w, "mlp_b": mlp_b,
        "trans_map_w": tm_w, "trans_map_b": tm_b,
        "trans_ques_w": tq_w, "trans_ques_b": tq_b,
        "gatetag_w": gt_w, "gatetag_b": gt_b,
        # LayerNorm(normalized_shape=q_emb.shape): elementwise affine over (L, D)
        "ln_w": jnp.ones((L, D), jnp.float32),
        "ln_b": jnp.zeros((L, D), jnp.float32),
    }
    # NOTE: conv/conv1/conv2, att_des*, gatedes, attention, agg*, mlp_linear are
    # declared in __init__ but never used in forward(), so they carry no compute.

    # One-time prep (weight packing + PE folding), off the hot path.
    packed = prepare_here_last(params, L, D)
    packed = jax.tree_util.tree_map(jax.block_until_ready, packed)

    question_all, tag_all = here_last_forward(q_emb, t_emb, packed)
    jax.block_until_ready((question_all, tag_all))

    q_ref, t_ref = here_last_reference(q_emb, t_emb, params)
    assert jnp.allclose(question_all, q_ref, atol=1e-4, rtol=1e-4)
    assert jnp.allclose(tag_all, t_ref, atol=1e-4, rtol=1e-4)

    print("KERNEL_OK")
</pallas_src>

<mosaic_0001>
module attributes {stable_mosaic.version = 11 : i64} {
  func.func @_here_last_kernel(%arg0: memref<8x32xf32, #tpu.memory_space<vmem>>, %arg1: memref<8x32xf32, #tpu.memory_space<vmem>>, %arg2: memref<32x64xf32, #tpu.memory_space<vmem>>, %arg3: memref<1x32xf32, #tpu.memory_space<vmem>>, %arg4: memref<32x32xf32, #tpu.memory_space<vmem>>, %arg5: memref<1x32xf32, #tpu.memory_space<vmem>>, %arg6: memref<32x32xf32, #tpu.memory_space<vmem>>, %arg7: memref<8x32xf32, #tpu.memory_space<vmem>>, %arg8: memref<8x32xf32, #tpu.memory_space<vmem>>, %arg9: memref<8x32xf32, #tpu.memory_space<vmem>>, %arg10: memref<32x32xf32, #tpu.memory_space<vmem>>, %arg11: memref<1x32xf32, #tpu.memory_space<vmem>>, %arg12: memref<8x32xf32, #tpu.memory_space<vmem>>, %arg13: memref<8x32xf32, #tpu.memory_space<vmem>>) attributes {dimension_semantics = [], scalar_prefetch = 0 : i64, scratch_operands = 0 : i64, tpu.core_type = #tpu.core_type<tc>} {
    %c0 = arith.constant 0 : index
    %c0_0 = arith.constant 0 : index
    %0 = vector.load %arg0[%c0, %c0_0] : memref<8x32xf32, #tpu.memory_space<vmem>>, vector<8x32xf32>
    %c0_1 = arith.constant 0 : index
    %c0_2 = arith.constant 0 : index
    %1 = vector.load %arg2[%c0_1, %c0_2] : memref<32x64xf32, #tpu.memory_space<vmem>>, vector<32x64xf32>
    %cst = arith.constant dense<0.000000e+00> : vector<8x64xf32>
    %2 = tpu.matmul %0, %1, %cst {dimension_numbers = #tpu.dot_dimension_numbers<[1], [0], [0], [1], [0, 0, 1, 1], [], []>} : vector<8x32xf32>, vector<32x64xf32>, vector<8x64xf32> -> vector<8x64xf32>
    %3 = vector.extract_strided_slice %2 {offsets = [0, 0], sizes = [8, 32], strides = [1, 1]} : vector<8x64xf32> to vector<8x32xf32>
    %c0_3 = arith.constant 0 : index
    %c0_4 = arith.constant 0 : index
    %4 = vector.load %arg3[%c0_3, %c0_4] : memref<1x32xf32, #tpu.memory_space<vmem>>, vector<1x32xf32>
    %5 = vector.broadcast %4 : vector<1x32xf32> to vector<8x32xf32>
    %6 = arith.addf %3, %5 : vector<8x32xf32>
    %cst_5 = arith.constant 0.000000e+00 : f32
    %7 = vector.broadcast %cst_5 : f32 to vector<8x32xf32>
    %8 = arith.maximumf %6, %7 : vector<8x32xf32>
    %9 = vector.extract_strided_slice %2 {offsets = [0, 32], sizes = [8, 32], strides = [1, 1]} : vector<8x64xf32> to vector<8x32xf32>
    %c0_6 = arith.constant 0 : index
    %c0_7 = arith.constant 0 : index
    %10 = vector.load %arg4[%c0_6, %c0_7] : memref<32x32xf32, #tpu.memory_space<vmem>>, vector<32x32xf32>
    %cst_8 = arith.constant dense<0.000000e+00> : vector<8x32xf32>
    %11 = tpu.matmul %8, %10, %cst_8 {dimension_numbers = #tpu.dot_dimension_numbers<[1], [0], [0], [1], [0, 0, 1, 1], [], []>} : vector<8x32xf32>, vector<32x32xf32>, vector<8x32xf32> -> vector<8x32xf32>
    %12 = arith.addf %9, %11 : vector<8x32xf32>
    %c0_9 = arith.constant 0 : index
    %c0_10 = arith.constant 0 : index
    %13 = vector.load %arg5[%c0_9, %c0_10] : memref<1x32xf32, #tpu.memory_space<vmem>>, vector<1x32xf32>
    %14 = vector.broadcast %13 : vector<1x32xf32> to vector<8x32xf32>
    %15 = arith.addf %12, %14 : vector<8x32xf32>
    %cst_11 = arith.constant 0.000000e+00 : f32
    %16 = vector.broadcast %cst_11 : f32 to vector<8x32xf32>
    %17 = arith.maximumf %15, %16 : vector<8x32xf32>
    %c0_12 = arith.constant 0 : index
    %c0_13 = arith.constant 0 : index
    %18 = vector.load %arg6[%c0_12, %c0_13] : memref<32x32xf32, #tpu.memory_space<vmem>>, vector<32x32xf32>
    %cst_14 = arith.constant dense<0.000000e+00> : vector<8x32xf32>
    %19 = tpu.matmul %17, %18, %cst_14 {dimension_numbers = #tpu.dot_dimension_numbers<[1], [0], [0], [1], [0, 0, 1, 1], [], []>} : vector<8x32xf32>, vector<32x32xf32>, vector<8x32xf32> -> vector<8x32xf32>
    %c0_15 = arith.constant 0 : index
    %c0_16 = arith.constant 0 : index
    %20 = vector.load %arg7[%c0_15, %c0_16] : memref<8x32xf32, #tpu.memory_space<vmem>>, vector<8x32xf32>
    %21 = arith.addf %19, %20 : vector<8x32xf32>
    %cst_17 = arith.constant 0.000000e+00 : f32
    %22 = vector.broadcast %cst_17 : f32 to vector<8x32xf32>
    %23 = arith.maximumf %21, %22 : vector<8x32xf32>
    %24 = arith.addf %23, %0 : vector<8x32xf32>
    %25 = vector.shape_cast %24 : vector<8x32xf32> to vector<1x8x32xf32>
    %cst_18 = arith.constant dense<0.000000e+00> : vector<1xf32>
    %26 = vector.multi_reduction <add>, %25, %cst_18 [1, 2] : vector<1x8x32xf32> to vector<1xf32>
    %27 = vector.shape_cast %26 : vector<1xf32> to vector<1x1x1xf32>
    %28 = vector.extract %27[0, 0, 0] : f32 from vector<1x1x1xf32>
    %cst_19 = arith.constant 2.560000e+02 : f32
    %29 = arith.divf %28, %cst_19 : f32
    %30 = vector.broadcast %29 : f32 to vector<8x32xf32>
    %31 = arith.subf %24, %30 : vector<8x32xf32>
    %32 = vector.broadcast %29 : f32 to vector<8x32xf32>
    %33 = arith.subf %24, %32 : vector<8x32xf32>
    %34 = arith.mulf %31, %33 : vector<8x32xf32>
    %35 = vector.shape_cast %34 : vector<8x32xf32> to vector<1x8x32xf32>
    %cst_20 = arith.constant dense<0.000000e+00> : vector<1xf32>
    %36 = vector.multi_reduction <add>, %35, %cst_20 [1, 2] : vector<1x8x32xf32> to vector<1xf32>
    %37 = vector.shape_cast %36 : vector<1xf32> to vector<1x1x1xf32>
    %38 = vector.extract %37[0, 0, 0] : f32 from vector<1x1x1xf32>
    %cst_21 = arith.constant 2.560000e+02 : f32
    %39 = arith.divf %38, %cst_21 : f32
    %40 = vector.broadcast %29 : f32 to vector<8x32xf32>
    %41 = arith.subf %24, %40 : vector<8x32xf32>
    %cst_22 = arith.constant 9.99999974E-6 : f32
    %42 = arith.addf %39, %cst_22 : f32
    %43 = math.rsqrt %42 : f32
    %44 = vector.broadcast %43 : f32 to vector<8x32xf32>
    %45 = arith.mulf %41, %44 : vector<8x32xf32>
    %c0_23 = arith.constant 0 : index
    %c0_24 = arith.constant 0 : index
    %46 = vector.load %arg8[%c0_23, %c0_24] : memref<8x32xf32, #tpu.memory_space<vmem>>, vector<8x32xf32>
    %47 = arith.mulf %45, %46 : vector<8x32xf32>
    %c0_25 = arith.constant 0 : index
    %c0_26 = arith.constant 0 : index
    %48 = vector.load %arg9[%c0_25, %c0_26] : memref<8x32xf32, #tpu.memory_space<vmem>>, vector<8x32xf32>
    %49 = arith.addf %47, %48 : vector<8x32xf32>
    %c0_27 = arith.constant 0 : index
    %c0_28 = arith.constant 0 : index
    %50 = vector.load %arg12[%c0_27, %c0_28] : memref<8x32xf32, #tpu.memory_space<vmem>>, vector<8x32xf32>
    tpu.vector_store %arg12[%c0_27, %c0_28], %49 {strides = array<i32>} : memref<8x32xf32, #tpu.memory_space<vmem>>, vector<8x32xf32>,
    %c0_29 = arith.constant 0 : index
    %c0_30 = arith.constant 0 : index
    %51 = vector.load %arg1[%c0_29, %c0_30] : memref<8x32xf32, #tpu.memory_space<vmem>>, vector<8x32xf32>
    %c0_31 = arith.constant 0 : index
    %c0_32 = arith.constant 0 : index
    %52 = vector.load %arg10[%c0_31, %c0_32] : memref<32x32xf32, #tpu.memory_space<vmem>>, vector<32x32xf32>
    %cst_33 = arith.constant dense<0.000000e+00> : vector<8x32xf32>
    %53 = tpu.matmul %51, %52, %cst_33 {dimension_numbers = #tpu.dot_dimension_numbers<[1], [0], [0], [1], [0, 0, 1, 1], [], []>} : vector<8x32xf32>, vector<32x32xf32>, vector<8x32xf32> -> vector<8x32xf32>
    %c0_34 = arith.constant 0 : index
    %c0_35 = arith.constant 0 : index
    %54 = vector.load %arg11[%c0_34, %c0_35] : memref<1x32xf32, #tpu.memory_space<vmem>>, vector<1x32xf32>
    %55 = vector.broadcast %54 : vector<1x32xf32> to vector<8x32xf32>
    %56 = arith.addf %53, %55 : vector<8x32xf32>
    %57 = arith.negf %56 : vector<8x32xf32>
    %58 = math.exp %57 : vector<8x32xf32>
    %cst_36 = arith.constant 1.000000e+00 : f32
    %59 = vector.broadcast %cst_36 : f32 to vector<8x32xf32>
    %60 = arith.addf %59, %58 : vector<8x32xf32>
    %61 = arith.divf %59, %60 : vector<8x32xf32>
    %62 = arith.mulf %61, %51 : vector<8x32xf32>
    %c0_37 = arith.constant 0 : index
    %c0_38 = arith.constant 0 : index
    %63 = vector.load %arg13[%c0_37, %c0_38] : memref<8x32xf32, #tpu.memory_space<vmem>>, vector<8x32xf32>
    tpu.vector_store %arg13[%c0_37, %c0_38], %62 {strides = array<i32>} : memref<8x32xf32, #tpu.memory_space<vmem>>, vector<8x32xf32>,
    return
  }
}

</mosaic_0001>

<bundles_post_ra>
// kernel: here_last_forward.1
= control target key start
LH: loop header
LB: loop body
LE: loop exit
PB: predicated region body
PF: predicated region fallthrough
CT: control target
= control target key end

     0   :  { %19 = vsyncpa [#allocation3], 0  ;;  %s942_s0 = inlined_call_operand.hbm [shape: f32[8,32], index: 0, kind: input, shape index: {}]   ;;  %s943_s1 = inlined_call_operand.hbm [shape: f32[8,32], index: 1, kind: input, shape index: {}]   ;;  %s944_s2 = inlined_call_operand.hbm [shape: f32[32,64], index: 2, kind: input, shape index: {}]   ;;  %s945_s3 = inlined_call_operand.vmem [shape: f32[1,32], index: 3, kind: input, shape index: {}]   ;;  %s946_s4 = inlined_call_operand.hbm [shape: f32[32,32], index: 4, kind: input, shape index: {}]   ;;  %s947_s5 = inlined_call_operand.vmem [shape: f32[1,32], index: 5, kind: input, shape index: {}]   ;;  %s948_s6 = inlined_call_operand.hbm [shape: f32[32,32], index: 6, kind: input, shape index: {}]   ;;  %s949_s7 = inlined_call_operand.hbm [shape: f32[8,32], index: 7, kind: input, shape index: {}]   ;;  %s950_s8 = inlined_call_operand.hbm [shape: f32[8,32], index: 8, kind: input, shape index: {}]   ;;  %s951_s9 = inlined_call_operand.hbm [shape: f32[8,32], index: 9, kind: input, shape index: {}]   ;;  %s952_s10 = inlined_call_operand.hbm [shape: f32[32,32], index: 10, kind: input, shape index: {}]   ;;  %s953_s11 = inlined_call_operand.hbm [shape: f32[1,32], index: 11, kind: input, shape index: {}]   ;;  %s954_s12 = inlined_call_operand.hbm [shape: f32[8,32], index: 12, kind: output, shape index: {0}]   ;;  %s955_s13 = inlined_call_operand.hbm [shape: f32[8,32], index: 13, kind: output, shape index: {1}]  }
   0x1   :  { %20 = vsyncpa [#allocation6], 0 }
   0x2   :  { %21 = vsyncpa [#allocation9], 0 }
   0x3   :  { %22 = vsyncpa [#allocation12], 0 }
   0x4   :  { %23 = vsyncpa [#allocation15], 0 }
   0x5   :  { %24 = vsyncpa [#allocation18], 0 }
   0x6   :  { %25 = vsyncpa [#allocation4], 0  ;;  %s43_s27 = sshll.u32 %s943_s1, 4  ;;  %s44_s27 = int_to_ptr.hbm [resolvable:$true] %s43_s27 }
   0x7   :  { %26 = vsyncpa [#allocation21], 0  ;;  %s793_s28 = smov [#allocation5]   ;;  %s68_s15 = sshll.u32 %s946_s4, 4  ;;  %s69_s15 = int_to_ptr.hbm [resolvable:$true] %s68_s15 }
   0x8   :  { %s45_s29 = sshll.u32 %s793_s28, 4  ;;  %s794_s16 = smov [#allocation8]   ;;  %s46_s29 = int_to_ptr.vmem [resolvable:$true] %s45_s29 }
   0x9   :  { %48 = dma.hbm_to_vmem [thread:$0]  %s44_s27, 128, %s46_s29, [#allocation6]  }
   0xa   :  { %s70_s17 = sshll.u32 %s794_s16, 4  ;;  %s97_s20 = sshll.u32 %s949_s7, 4  ;;  %s71_s17 = int_to_ptr.vmem [resolvable:$true] %s70_s17  ;;  %s98_s20 = int_to_ptr.hbm [resolvable:$true] %s97_s20 }
   0xb   :  { %s795_s1 = smov 128   ;;  %s796_s21 = smov 8  }
   0xc   :  { %76 = dma.hbm_to_vmem [thread:$0]  %s69_s15, 512, %s71_s17, [#allocation9], %s795_s1, %s795_s1, %s796_s21  }
   0xd   :  { %s119_s24 = sshll.u32 %s951_s9, 4  ;;  %s797_s4 = smov [#allocation11]   ;;  %s120_s24 = int_to_ptr.hbm [resolvable:$true] %s119_s24 }
   0xe   :  { %s99_s25 = sshll.u32 %s797_s4, 4  ;;  %s798_s26 = smov [#allocation14]   ;;  %s100_s25 = int_to_ptr.vmem [resolvable:$true] %s99_s25 }
   0xf   :  { %102 = dma.hbm_to_vmem [thread:$0]  %s98_s20, 128, %s100_s25, [#allocation12]  }
  0x10   :  { %s121_s27 = sshll.u32 %s798_s26, 4  ;;  %s32_s29 = sshll.u32 %s942_s0, 4  ;;  %s122_s27 = int_to_ptr.vmem [resolvable:$true] %s121_s27  ;;  %s33_s29 = int_to_ptr.hbm [resolvable:$true] %s32_s29 }
  0x11   :  { %124 = dma.hbm_to_vmem [thread:$0]  %s120_s24, 128, %s122_s27, [#allocation15]  }
  0x12   :  { %s53_s15 = sshll.u32 %s944_s2, 4  ;;  %s799_s16 = smov [#allocation2]   ;;  %s54_s15 = int_to_ptr.hbm [resolvable:$true] %s53_s15 }
  0x13   :  { %s34_s9 = sshll.u32 %s799_s16, 4  ;;  %s800_s17 = smov [#allocation7]   ;;  %s35_s9 = int_to_ptr.vmem [resolvable:$true] %s34_s9 }
  0x14   :  { %37 = dma.hbm_to_vmem [thread:$0]  %s33_s29, 128, %s35_s9, [#allocation3]  }
  0x15   :  { %s55_s18 = sshll.u32 %s800_s17, 4  ;;  %s83_s22 = sshll.u32 %s948_s6, 4  ;;  %s56_s18 = int_to_ptr.vmem [resolvable:$true] %s55_s18  ;;  %s84_s22 = int_to_ptr.hbm [resolvable:$true] %s83_s22 }
  0x16   :  { %61 = dma.hbm_to_vmem [thread:$0]  %s54_s15, 512, %s56_s18, [#allocation6], %s795_s1, %s795_s1, %s796_s21  }
  0x17   :  { %s108_s2 = sshll.u32 %s950_s8, 4  ;;  %s801_s24 = smov [#allocation10]   ;;  %s109_s2 = int_to_ptr.hbm [resolvable:$true] %s108_s2 }
  0x18   :  { %s85_s4 = sshll.u32 %s801_s24, 4  ;;  %s802_s25 = smov [#allocation13]   ;;  %s86_s4 = int_to_ptr.vmem [resolvable:$true] %s85_s4 }
  0x19   :  { %91 = dma.hbm_to_vmem [thread:$0]  %s84_s22, 512, %s86_s4, [#allocation9], %s795_s1, %s795_s1, %s796_s21  }
  0x1a   :  { %s110_s6 = sshll.u32 %s802_s25, 4  ;;  %s129_s7 = sshll.u32 %s952_s10, 4  ;;  %s111_s6 = int_to_ptr.vmem [resolvable:$true] %s110_s6  ;;  %s130_s7 = int_to_ptr.hbm [resolvable:$true] %s129_s7 }
  0x1b   :  { %113 = dma.hbm_to_vmem [thread:$0]  %s109_s2, 128, %s111_s6, [#allocation12]  }
  0x1c   :  { %s143_s8 = sshll.u32 %s953_s11, 4  ;;  %s803_s30 = smov [#allocation16]   ;;  %s144_s8 = int_to_ptr.hbm [resolvable:$true] %s143_s8 }
  0x1d   :  { %s131_s14 = sshll.u32 %s803_s30, 4  ;;  %s804_s15 = smov [#allocation17]   ;;  %s132_s14 = int_to_ptr.vmem [resolvable:$true] %s131_s14 }
  0x1e   :  { %137 = dma.hbm_to_vmem [thread:$0]  %s130_s7, 512, %s132_s14, [#allocation15], %s795_s1, %s795_s1, %s796_s21  }
  0x1f   :  { %s145_s16 = sshll.u32 %s804_s15, 4  ;;  %s146_s16 = int_to_ptr.vmem [resolvable:$true] %s145_s16 }
  0x20   :  { %148 = dma.hbm_to_vmem [thread:$0]  %s144_s8, 16, %s146_s16, [#allocation18]  }
  0x21   :  { %777 = dma.done.wait [#allocation3], 128  }
  0x22   :  { %778 = vsyncadd [#allocation3], 4294967168 }
  0x23   :  { %779 = dma.done.wait [#allocation6], 640  }
  0x24   :  { %780 = vsyncadd [#allocation6], 4294966656 }
  0x25   :  { %781 = dma.done.wait [#allocation9], 1024  }
  0x26   :  { %782 = vsyncadd [#allocation9], 4294966272 }
  0x27   :  { %783 = dma.done.wait [#allocation12], 256  }
  0x28   :  { %784 = vsyncadd [#allocation12], 4294967040 }
  0x29   :  { %785 = dma.done.wait [#allocation15], 640  }
  0x2a   :  { %786 = vsyncadd [#allocation15], 4294966656 }
  0x2b   :  { %787 = dma.done.wait [#allocation18], 16  }
  0x2c   :  { %788 = vsyncadd [#allocation18], 4294967280  ;;  %v193_v0 = vld [vmem:[#allocation7 + $0x18] sm:$0xff]  ;;  %v192_v1 = vld [vmem:[#allocation7 + $0x10] sm:$0xff]  ;;  %vm194_vm0 = vcmask 261120   ;;  %s805_s1 = smov 32  }
  0x2d   :  { %210 = vmatpush.msra.mxu0 %v193_v0  ;;  %v191_v2 = vld [vmem:[#allocation7 + $0x8] sm:$0xff]  ;;  %v227_v3 = vld [vmem:[#allocation8 + $0x18] sm:$0xff]  ;;  %v190_v4 = vld [vmem:[#allocation7] sm:$0xff]  ;;  %v807_v31 = vmov 256.0   ;;  %s808_s0 = smov [#allocation20]   ;;  %s428_s4 = sshll.u32 %s955_s13, 4  ;;  %s429_s4 = int_to_ptr.hbm [resolvable:$true] %s428_s4 }
  0x2e   :  { %243 = vmatpush.msra.mxu1 %v227_v3  ;;  %v189_v5 = vld [vmem:[#allocation2] sm:$0xff]  ;;  %v225_v7 = vld [vmem:[#allocation8 + $0x8] sm:$0xff]  ;;  %v224_v8 = vld [vmem:[#allocation8] sm:$0xff]  ;;  %481 = vrcp.f32 %v807_v31  ;;  %s426_s23 = sshll.u32 %s808_s0, 4  ;;  %s809_s6 = smov [#allocation19]   ;;  %s427_s23 = int_to_ptr.vmem [resolvable:$true] %s426_s23 }
  0x2f   :  { %211 = vmatpush.msra.mxu0 %v192_v1  ;;  %v226_v6 = vld [vmem:[#allocation8 + $0x10] sm:$0xff]  ;;  %v267_v15 = vld [vmem:[#allocation10 + $0x18] sm:$0xff]  ;;  %v265_v17 = vld [vmem:[#allocation10 + $0x8] sm:$0xff]  ;;  %s415_s26 = sshll.u32 %s809_s6, 4  ;;  %s417_s13 = sshll.u32 %s954_s12, 4  ;;  %s416_s26 = int_to_ptr.vmem [resolvable:$true] %s415_s26  ;;  %s418_s13 = int_to_ptr.hbm [resolvable:$true] %s417_s13 }
  0x30   :  { %244 = vmatpush.msra.mxu1 %v226_v6  ;;  %v478_v9 = vld [vmem:[%s945_s3] ss:$0 sm:$0xff]  ;;  %286 = vmatpush.msra.mxu2 %v267_v15  ;;  %v264_v18 = vld [vmem:[#allocation10] sm:$0xff]  ;;  %s806_s3 = smov 96   ;;  %v360_v46 = vld [vmem:[#allocation16 + $0x10] sm:$0xff] }
  0x31   :  { %212 = vmatpush.msra.mxu0 %v191_v2  ;;  %v479_v14 = vld [vmem:[%s947_s5] ss:$0 sm:$0xff]  ;;  %v268_v25 = vld [vmem:[#allocation11] sm:$0xff]  ;;  %v358_v48 = vld [vmem:[#allocation16] sm:$0xff] }
  0x32   :  { %245 = vmatpush.msra.mxu1 %v225_v7  ;;  %v266_v16 = vld [vmem:[#allocation10 + $0x10] sm:$0xff]  ;;  %v359_v47 = vld [vmem:[#allocation16 + $0x8] sm:$0xff]  ;;  %v357_v49 = vld [vmem:[#allocation5] sm:$0xff] }
  0x33   :  { %213 = vmatpush.msra.mxu0 %v190_v4  ;;  %287 = vmatpush.msra.mxu2 %v266_v16  ;;  %v361_v45 = vld [vmem:[#allocation16 + $0x18] sm:$0xff]  ;;  %v480_v61 = vld [vmem:[#allocation17] ss:$0 sm:$0xff] }
  0x34   :  { %448 = vmatmul.msk.f32.vlgmr.msra.gmra.mxu0 %vm194_vm0, %v189_v5  ;;  %246 = vmatpush.msra.mxu1 %v224_v8  ;;  %v482_v32 = vpop.eup %481 }
  0x35   :  { %288 = vmatpush.msra.mxu2 %v265_v17  ;;  %v307_v33 = vmul.f32 256.0, %v482_v32  ;;  %vm311_vm1 = vweird.f32 %v482_v32  ;;  %381 = vmatpush.msra.mxu3 %v361_v45 }
  0x37   :  { %289 = vmatpush.msra.mxu2 %v264_v18  ;;  %v308_v34 = vsub.f32 1.0, %v307_v33  ;;  %382 = vmatpush.msra.mxu3 %v360_v46 }
  0x39   :  { %v309_v38 = vmul.f32 %v482_v32, %v308_v34  ;;  %383 = vmatpush.msra.mxu3 %v359_v47 }
  0x3b   :  { %v310_v41 = vadd.f32 %v482_v32, %v309_v38  ;;  %384 = vmatpush.msra.mxu3 %v358_v48 }
  0x3c   :  { %451 = vmatmul.msk.f32.vlgmr.msra.gmra.mxu3 %vm194_vm0, %v357_v49 }
  0x3d   :  { %v312_v44 = vsel %vm311_vm1, %v482_v32, %v310_v41 }
  0xb1   :  { %v215_v10 = vpop.f32.mrf.mxu0 }
  0xb2   :  { %v222_v11 = vadd.f32 %v478_v9, %v215_v10 }
  0xb4   :  { %v223_v12 = vmax.f32 %v222_v11, 0.0 }
  0xb6   :  { %449 = vmatmul.msk.f32.vlgmr.msra.gmra.mxu1 %vm194_vm0, %v223_v12 }
  0xbf   :  { %v386_v62 = vpop.f32.mrf.mxu3 }
  0xc0   :  { %v387_v63 = vadd.f32 %v480_v61, %v386_v62 }
  0xc2   :  { %v452_v0 = vmul.f32 -1.442695, %v387_v63 }
  0xc4   :  { %483 = vpow2.f32 %v452_v0 }
  0xca   :  { %v484_v1 = vpop.eup %483 }
  0xcb   :  { %v392_v3 = vadd.f32 1.0, %v484_v1 }
  0xcd   :  { %v404_v15 = vand.u32 2147483648, %v392_v3  ;;  %vm398_vm5 = vweird.f32 %v392_v3  ;;  %v402_v17 = vand.u32 2147483647, %v392_v3 }
  0xcf   :  { %v405_v18 = vor.u32 1.1754944e-38, %v404_v15  ;;  %vm403_vm8 = vcmp.eq.f32.partialorder %v402_v17, 8.507059e+37 }
 0x133   :  { %v248_v13 = vpop.f32.mrf.mxu1 }
 0x134   :  { %252 = vrot.lane.b32.xlu0 %v248_v13, %s805_s1 }
 0x13c   :  { %259 = vrot.lane.b32.xlu0 %v479_v14, %s805_s1 }
 0x1a6   :  { %v253_v19 = vpop.permute.xlu0 %252 }
 0x1a7   :  { %v255_v20 = vadd.f32 %v253_v19, %v215_v10 }
 0x1ae   :  { %v260_v21 = vpop.permute.xlu0 %259 }
 0x1af   :  { %v262_v22 = vadd.f32 %v260_v21, %v255_v20 }
 0x1b1   :  { %v263_v23 = vmax.f32 %v262_v22, 0.0 }
 0x1b3   :  { %270 = vrot.lane.b32.xlu1 %v263_v23, %s806_s3  ;;  %v352_v23 = vld [vmem:[#allocation13] sm:$0xff] }
 0x225   :  { %v271_v24 = vpop.permute.xlu1 %270 }
 0x226   :  { %450 = vmatmul.msk.f32.vlgmr.msra.gmra.mxu2 %vm194_vm0, %v271_v24 }
 0x2a9   :  { %v291_v26 = vpop.f32.mrf.mxu2 }
 0x2aa   :  { %v292_v27 = vadd.f32 %v291_v26, %v268_v25  ;;  %v354_v25 = vld [vmem:[#allocation14] sm:$0xff] }
 0x2ac   :  { %v294_v28 = vmax.f32 %v292_v27, 0.0 }
 0x2ae   :  { %v295_v29 = vadd.f32 %v294_v28, %v189_v5 }
 0x2b0   :  { %v296_v30 = vsel %vm194_vm0, %v295_v29, 0.0 }
 0x2b1   :  { %297 = vadd.xlane.f32.xlu1 %v296_v30 }
 0x324   :  { %v298_v35 = vpop.xlane.xlu1 %297 }
 0x325   :  { %v299_v36 = vrot.slane %v298_v35, 4 }
 0x327   :  { %v300_v37 = vadd.f32 %v299_v36, %v298_v35 }
 0x329   :  { %v301_v39 = vrot.slane %v300_v37, 2 }
 0x32b   :  { %v302_v40 = vadd.f32 %v301_v39, %v300_v37 }
 0x32d   :  { %v303_v42 = vrot.slane %v302_v40, 1 }
 0x32f   :  { %v304_v43 = vadd.f32 %v303_v42, %v302_v40 }
 0x331   :  { %453 = vpush %v304_v43 }
 0x332   :  { %455 = vpush %v312_v44 }
 0x362   :  { %s454_s5 = spop %453 }
 0x363   :  { %s456_s17 = spop %455 }
 0x364   :  { %s314_s18 = smul.f32 %s456_s17, %s454_s5 }
 0x366   :  { %v315_v50 = vstv %s314_s18 }
 0x367   :  { %v316_v51 = vsub.f32 %v295_v29, %v315_v50 }
 0x369   :  { %v317_v52 = vmul.f32 %v316_v51, %v316_v51 }
 0x36b   :  { %v318_v53 = vsel %vm194_vm0, %v317_v52, 0.0 }
 0x36c   :  { %319 = vadd.xlane.f32.xlu2 %v318_v53 }
 0x3df   :  { %v320_v54 = vpop.xlane.xlu2 %319 }
 0x3e0   :  { %v321_v55 = vrot.slane %v320_v54, 4 }
 0x3e2   :  { %v322_v56 = vadd.f32 %v321_v55, %v320_v54 }
 0x3e4   :  { %v323_v57 = vrot.slane %v322_v56, 2 }
 0x3e6   :  { %v324_v58 = vadd.f32 %v323_v57, %v322_v56 }
 0x3e8   :  { %v325_v59 = vrot.slane %v324_v58, 1 }
 0x3ea   :  { %v326_v60 = vadd.f32 %v325_v59, %v324_v58 }
 0x3ec   :  { %457 = vpush %v326_v60 }
 0x41d   :  { %s458_s19 = spop %457 }
 0x41e   :  { %s336_s20 = smul.f32 %s458_s19, %s456_s17 }
 0x420   :  { %s337_s22 = sadd.f32 1e-05, %s336_s20 }
 0x422   :  { %v338_v2 = vstv %s337_s22 }
 0x423   :  { %485 = vrsqrt.f32 %v338_v2  ;;  %vm345_vm3 = vweird.f32 %v338_v2 }
 0x424   :  { %487 = vrcp.f32 %v392_v3 }
 0x429   :  { %v486_v4 = vpop.eup %485 }
 0x42a   :  { %v340_v5 = vmul.f32 %v486_v4, %v338_v2  ;;  %v488_v7 = vpop.eup %487  ;;  %vm346_vm2 = vweird.f32 %v486_v4 }
 0x42b   :  { %v394_v10 = vmul.f32 %v488_v7, %v392_v3  ;;  %vm347_vm4 = vmor %vm345_vm3, %vm346_vm2  ;;  %vm399_vm6 = vweird.f32 %v488_v7 }
 0x42c   :  { %v341_v6 = vmul.f32 %v486_v4, %v340_v5  ;;  %vm400_vm7 = vmor %vm398_vm5, %vm399_vm6 }
 0x42d   :  { %v395_v13 = vsub.f32 1.0, %v394_v10 }
 0x42e   :  { %v342_v8 = vmul.f32 0.5, %v341_v6 }
 0x42f   :  { %v396_v14 = vmul.f32 %v488_v7, %v395_v13 }
 0x430   :  { %v343_v9 = vsub.f32 1.5, %v342_v8 }
 0x431   :  { %v397_v16 = vadd.f32 %v488_v7, %v396_v14 }
 0x432   :  { %v344_v11 = vmul.f32 %v486_v4, %v343_v9 }
 0x433   :  { %v401_v19 = vsel %vm400_vm7, %v488_v7, %v397_v16 }
 0x434   :  { %v348_v12 = vsel %vm347_vm4, %v486_v4, %v344_v11  ;;  %v406_v20 = vsel %vm403_vm8, %v405_v18, %v401_v19 }
 0x435   :  { %459 = vpush %v348_v12  ;;  %v408_v21 = vmul.f32 %v406_v20, %v357_v49 }
 0x437   :  { %409 = vst.msk [vmem:[#allocation20] sm:$0xff] %vm194_vm0, %v408_v21 }
 0x438   :  { %431 = dma.vmem_to_hbm [thread:$0]  %s427_s23, 128, %s429_s4, [#allocation21]  }
 0x466   :  { %s460_s25 = spop %459 }
 0x467   :  { %v350_v22 = vstv %s460_s25 }
 0x468   :  { %v351_v24 = vmul.f32 %v350_v22, %v316_v51 }
 0x46a   :  { %v353_v26 = vmul.f32 %v352_v23, %v351_v24 }
 0x46c   :  { %v355_v27 = vadd.f32 %v354_v25, %v353_v26 }
 0x46e   :  { %356 = vst.msk [vmem:[#allocation19] sm:$0xff] %vm194_vm0, %v355_v27 }
 0x46f   :  { %420 = dma.vmem_to_hbm [thread:$0]  %s416_s26, 128, %s418_s13, [#allocation4]  }
 0x470   :  { %789 = dma.done.wait [#allocation4], 128  }
 0x471   :  { %790 = vsyncadd [#allocation4], 4294967168 }
 0x472   :  { %791 = dma.done.wait [#allocation21], 128  }
 0x473   :  { %792 = vsyncadd [#allocation21], 4294967168 }
 0x474   :  { %440 = vsyncpa [#allocation3], 1 }
 0x475   :  { %441 = vsyncpa [#allocation6], 1 }
 0x476   :  { %442 = vsyncpa [#allocation9], 1 }
 0x477   :  { %443 = vsyncpa [#allocation12], 1 }
 0x478   :  { %444 = vsyncpa [#allocation15], 1 }
 0x479   :  { %445 = vsyncpa [#allocation18], 1 }
 0x47a   :  { %446 = vsyncpa [#allocation4], 1 }
 0x47b   :  { %447 = vsyncpa [#allocation21], 1 }

</bundles_post_ra>
